<compile_context>
chip_gen: v6e
topology: v6e:2x2x1
jax: 0.10.0
libtpu: 0.0.40
codegen_flags: <defaults>
</compile_context>

<pallas_src>
import functools

import jax
import jax.numpy as jnp
from jax import lax
from jax.experimental import pallas as pl
from jax.experimental.pallas import tpu as pltpu


def _round_up(x, m):
    return ((x + m - 1) // m) * m


def _cdiv(x, m):
    return (x + m - 1) // m


def _gram_kernel(f_ref, o_ref, *, hw, tk, mask_tail, use_bf16):
    # f_ref: (1, C, TK) feature chunk for the current batch element.
    # o_ref: (1, C, C)  f32 gram output; its block index is constant along the
    #        reduction axis, so it stays resident in VMEM and doubles as the
    #        accumulator.
    k = pl.program_id(1)

    @pl.when(k == 0)
    def _():
        o_ref[...] = jnp.zeros_like(o_ref)

    f = f_ref[0]  # (C, TK)
    if mask_tail:
        # Zero lanes past the true HW extent of this chunk (only the last
        # chunk is actually partial; for earlier chunks the where is a no-op).
        lane = lax.broadcasted_iota(jnp.int32, f.shape, dimension=1)
        f = jnp.where(lane < (hw - k * tk), f, jnp.zeros_like(f))
    if use_bf16:
        f = f.astype(jnp.bfloat16)

    # f @ f^T: contract both operands on their last (HW / lane) axis.
    # TODO(synk): dump MLIR/bundles to confirm this lowers without a per-chunk
    # XLU transpose of the (C, TK) block; if vxpose dominates, switch to the
    # (TK, C)-contract-on-dim-0 formulation.
    o_ref[0] += lax.dot_general(
        f, f,
        dimension_numbers=(((1,), (1,)), ((), ())),
        preferred_element_type=jnp.float32,
    )


def gram_matrix(x, *, tk_target=16384, use_bf16=False):
    """x: (B, C, H, W) float array -> (B, C, C) gram matrices (float32)."""
    B, C, H, W = x.shape
    HW = H * W
    features = x.reshape(B, C, HW)  # pure view/glue in plain JAX

    # Tiny C (e.g. RGB): vreg sublanes and the MXU N dim are mostly idle; the
    # problem is trivially HBM-bound and XLA's fused einsum matches a kernel.
    if C < 8:
        f32 = features.astype(jnp.float32)
        return jnp.einsum("bcn,bdn->bcd", f32, f32)

    itemsize = jnp.dtype(features.dtype).itemsize

    # --- Tile-size / VMEM budgeting (conservative for v7x's 64 MiB VMEM) ----
    vmem_cap = 48 * 1024 * 1024          # total resident budget (v7x-safe)
    out_bytes = 2 * C * C * 4            # (double-buffered) output block
    headroom = 4 * 1024 * 1024
    # Double-buffered input chunks: <= 16 MiB total, and at most what's left of
    # the 48 MiB cap after the output block + headroom.
    input_budget = min(
        16 * 1024 * 1024,
        max(vmem_cap - out_bytes - headroom, 2 * 128 * C * itemsize),
    )
    tk_by_vmem = max(128, (input_budget // max(1, 2 * C * itemsize)) // 128 * 128)
    tk = min(_round_up(HW, 128), tk_by_vmem, _round_up(tk_target, 128))
    nk = _cdiv(HW, tk)
    mask_tail = (HW % tk) != 0

    vmem_limit = min(
        max(2 * C * tk * itemsize + out_bytes + headroom, 16 * 1024 * 1024),
        56 * 1024 * 1024,
    )

    kernel = functools.partial(
        _gram_kernel, hw=HW, tk=tk, mask_tail=mask_tail, use_bf16=use_bf16)

    # TODO(synk): for B == 1 on v7x add a second parallel axis splitting the HW
    # reduction across the two TensorCores (partials summed in the wrapper).
    # TODO(synk): for large C (>= ~256 in f32) exploit Gram symmetry with an
    # (i, j >= i) output tiling and mirror the lower triangle.
    return pl.pallas_call(
        kernel,
        out_shape=jax.ShapeDtypeStruct((B, C, C), jnp.float32),
        grid_spec=pltpu.PrefetchScalarGridSpec(
            num_scalar_prefetch=0,
            grid=(B, nk),                  # batch parallel, HW reduction last
            in_specs=[pl.BlockSpec((1, C, tk), lambda b, k: (b, 0, k))],
            out_specs=pl.BlockSpec((1, C, C), lambda b, k: (b, 0, 0)),
        ),
        compiler_params=pltpu.CompilerParams(
            dimension_semantics=("parallel", "arbitrary"),
            vmem_limit_bytes=int(vmem_limit),
        ),
        cost_estimate=pl.CostEstimate(
            flops=2 * B * C * C * HW,
            transcendentals=0,
            bytes_accessed=B * C * HW * itemsize + B * C * C * 4,
        ),
    )(features)


if __name__ == "__main__":
    key = jax.random.PRNGKey(0)

    # Pallas path: C >= 8, HW = 288 is not a multiple of the tile, so this
    # exercises the in-kernel tail mask; tk_target=128 forces a 3-chunk
    # reduction over the resident output accumulator.
    B, C, H, W = 2, 32, 16, 18
    x = jax.random.normal(key, (B, C, H, W), dtype=jnp.float32)

    gram = gram_matrix(x, tk_target=128)
    jax.block_until_ready(gram)

    feats = x.reshape(B, C, H * W)
    ref = jnp.einsum("bcn,bdn->bcd", feats, feats)
    assert gram.shape == (B, C, C)
    assert jnp.allclose(gram, ref, atol=1e-3, rtol=1e-4), "f32 multi-chunk path mismatch"

    # Default (large-tile, single-chunk) path.
    gram2 = gram_matrix(x)
    jax.block_until_ready(gram2)
    assert jnp.allclose(gram2, ref, atol=1e-3, rtol=1e-4), "default-tile path mismatch"

    # Opt-in bf16 feature cast (f32 accumulate): looser tolerance.
    gram_bf16 = gram_matrix(x, tk_target=128, use_bf16=True)
    jax.block_until_ready(gram_bf16)
    assert jnp.allclose(gram_bf16, ref, atol=0.5, rtol=5e-2), "bf16 path mismatch"

    # Tiny-C fallback (RGB-style Gram) uses plain einsum.
    xs = jax.random.normal(jax.random.PRNGKey(0), (2, 4, 16, 16), dtype=jnp.float32)
    gram_small = gram_matrix(xs)
    jax.block_until_ready(gram_small)
    fs = xs.reshape(2, 4, 256)
    refs = jnp.einsum("bcn,bdn->bcd", fs, fs)
    assert gram_small.shape == (2, 4, 4)
    assert jnp.allclose(gram_small, refs, atol=1e-4, rtol=1e-4), "tiny-C fallback mismatch"

    print("KERNEL_OK")
</pallas_src>

<mosaic_0001>
module attributes {stable_mosaic.version = 11 : i64} {
  func.func @_gram_kernel(%arg0: i32, %arg1: i32, %arg2: memref<1x32x128xf32, #tpu.memory_space<vmem>>, %arg3: memref<1x32x32xf32, #tpu.memory_space<vmem>>) attributes {dimension_semantics = [#tpu.dimension_semantics<parallel>, #tpu.dimension_semantics<arbitrary>], iteration_bounds = array<i64: 2, 3>, scalar_prefetch = 0 : i64, scratch_operands = 0 : i64, tpu.core_type = #tpu.core_type<tc>, window_params = [{transform_indices = @transform_0, window_bounds = array<i64: 1, 32, 128>}, {transform_indices = @transform_1, window_bounds = array<i64: 1, 32, 32>}]} {
    %c0_i32 = arith.constant 0 : i32
    %0 = arith.cmpi eq, %arg1, %c0_i32 : i32
    %1 = arith.extui %0 : i1 to i32
    %c0_i32_0 = arith.constant 0 : i32
    %2 = arith.cmpi ne, %1, %c0_i32_0 : i32
    scf.if %2 {
      %cst_10 = arith.constant 0.000000e+00 : f32
      %19 = vector.broadcast %cst_10 : f32 to vector<1x32x32xf32>
      %c0_11 = arith.constant 0 : index
      %c0_12 = arith.constant 0 : index
      %c0_13 = arith.constant 0 : index
      %20 = vector.load %arg3[%c0_11, %c0_12, %c0_13] : memref<1x32x32xf32, #tpu.memory_space<vmem>>, vector<1x32x32xf32>
      tpu.vector_store %arg3[%c0_11, %c0_12, %c0_13], %19 {strides = array<i32>} : memref<1x32x32xf32, #tpu.memory_space<vmem>>, vector<1x32x32xf32>,
    } else {
    }
    %c0 = arith.constant 0 : index
    %c0_1 = arith.constant 0 : index
    %c0_2 = arith.constant 0 : index
    %3 = vector.load %arg2[%c0, %c0_1, %c0_2] : memref<1x32x128xf32, #tpu.memory_space<vmem>>, vector<1x32x128xf32>
    %4 = vector.shape_cast %3 : vector<1x32x128xf32> to vector<32x128xf32>
    %5 = tpu.iota {dimensions = array<i32: 1>} : vector<32x128xi32>
    %c128_i32 = arith.constant 128 : i32
    %6 = arith.muli %arg1, %c128_i32 : i32
    %c288_i32 = arith.constant 288 : i32
    %7 = arith.subi %c288_i32, %6 : i32
    %8 = vector.broadcast %7 : i32 to vector<32x128xi32>
    %9 = arith.cmpi slt, %5, %8 : vector<32x128xi32>
    %cst = arith.constant 0.000000e+00 : f32
    %10 = vector.broadcast %cst : f32 to vector<32x128xf32>
    %11 = arith.select %9, %4, %10 : vector<32x128xi1>, vector<32x128xf32>
    %c0_3 = arith.constant 0 : index
    %c0_4 = arith.constant 0 : index
    %c0_5 = arith.constant 0 : index
    %12 = vector.load %arg3[%c0_3, %c0_4, %c0_5] : memref<1x32x32xf32, #tpu.memory_space<vmem>>, vector<1x32x32xf32>
    %13 = vector.shape_cast %12 : vector<1x32x32xf32> to vector<32x32xf32>
    %cst_6 = arith.constant dense<0.000000e+00> : vector<32x32xf32>
    %14 = tpu.matmul %11, %11, %cst_6 {dimension_numbers = #tpu.dot_dimension_numbers<[1], [1], [0], [0], [0, 0, 1, 0], [], []>} : vector<32x128xf32>, vector<32x128xf32>, vector<32x32xf32> -> vector<32x32xf32>
    %15 = arith.addf %13, %14 : vector<32x32xf32>
    %c0_7 = arith.constant 0 : index
    %c0_8 = arith.constant 0 : index
    %c0_9 = arith.constant 0 : index
    %16 = vector.load %arg3[%c0_7, %c0_8, %c0_9] : memref<1x32x32xf32, #tpu.memory_space<vmem>>, vector<1x32x32xf32>
    %17 = vector.shape_cast %16 : vector<1x32x32xf32> to vector<32x32xf32>
    %18 = vector.shape_cast %15 : vector<32x32xf32> to vector<1x32x32xf32>
    tpu.vector_store %arg3[%c0_7, %c0_8, %c0_9], %18 {strides = array<i32>} : memref<1x32x32xf32, #tpu.memory_space<vmem>>, vector<1x32x32xf32>,
    return
  }
  func.func @transform_0(%arg0: i32, %arg1: i32) -> (i32, i32, i32) {
    %c0_i32 = arith.constant 0 : i32
    %c0_i32_0 = arith.constant 0 : i32
    return %arg0, %c0_i32, %arg1 : i32, i32, i32
  }
  func.func @transform_1(%arg0: i32, %arg1: i32) -> (i32, i32, i32) {
    %c0_i32 = arith.constant 0 : i32
    %c0_i32_0 = arith.constant 0 : i32
    %c0_i32_1 = arith.constant 0 : i32
    return %arg0, %c0_i32, %c0_i32_0 : i32, i32, i32
  }
}

</mosaic_0001>

<bundles_post_ra>
// kernel: tpu_custom_call.1
= control target key start
LH: loop header
LB: loop body
LE: loop exit
PB: predicated region body
PF: predicated region fallthrough
CT: control target
= control target key end

     0   :  { %6 = vsyncpa [#allocation3], 0  ;;  %s959_s0 = inlined_call_operand.hbm [shape: f32[2,32,288], index: 0, kind: input, shape index: {}]   ;;  %s960_s1 = inlined_call_operand.hbm [shape: f32[2,32,32], index: 1, kind: output, shape index: {}]  }
   0x1   :  { %8 = vsyncpa [#allocation3 + $0x1], 0 }
   0x2   :  { %9 = vsyncpa [#allocation4], 0 }
   0x3   :  { %11 = vsyncpa [#allocation4 + $0x1], 0  ;;  %s703_s6 = smov 0   ;;  %s705_s7 = smov 0  }
   0x4   :  { %s707_s8 = smov 0   ;;  %s709_s9 = smov 0  }
   0x5   :  { %s711_s10 = smov 0   ;;  %s713_s11 = smov 0  }
   0x6   :  { %s715_s12 = smov 0   ;;  %s717_s13 = smov 0  }
   0x7   :  { %s719_s14 = smov 0   ;;  %s721_s15 = smov 0  }
   0x8   :  { %s723_s16 = smov 0  }
   0x9 LB: > { %s371_s17 = sadd.s32 4294967295, %s683_s16   ;;  %s372_s18 = sadd.s32 4294967294, %s683_s16   ;;  %s683_s16 = sphi %s723_s16, %s17_s16   ;;  %s679_s15 = sphi %s721_s15, %s983_s15   ;;  %s675_s14 = sphi %s719_s14, %s982_s14   ;;  %s671_s13 = sphi %s717_s13, %s981_s13   ;;  %s667_s12 = sphi %s715_s12, %s980_s12   ;;  %s663_s11 = sphi %s713_s11, %s979_s11   ;;  %s659_s10 = sphi %s711_s10, %s978_s10   ;;  %s655_s9 = sphi %s709_s9, %s977_s9   ;;  %s651_s8 = sphi %s707_s8, %s976_s8   ;;  %s647_s7 = sphi %s705_s7, %s975_s7   ;;  %s643_s6 = sphi %s703_s6, %s974_s6  }
   0xa   : > { %s26_s19 = sadd.s32 1, %s675_s14  ;;  %s29_s20 = sadd.s32 1, %s679_s15 }
   0xb   : > { %p27_p0 = scmp.ge.s32.totalorder %s26_s19, 3  ;;  %s38_s21 = sadd.s32 1, %s663_s11 }
   0xc   : > { %p45_p1 = scmp.ne.s32.totalorder %s663_s11, %s659_s10  ;;  %p46_p2 = scmp.eq.s32.totalorder %s683_s16, 0 }
   0xd   : > { %s985_s19 = smov (%p27_p0, %s26_s19), 0  ;;  %s987_s20 = smov (!%p27_p0, %s29_s20), %s679_s15 }
   0xe   : > { %963 = sst [smem:[#allocation8_spill]] %s985_s19  ;;  %s34_s22 = ssub.s32 %s675_s14, %s985_s19 }
   0xf   : > { %p769_p3 = por %p46_p2, %p45_p1  ;;  %p31_p4 = scmp.ge.s32.totalorder %s987_s20, 2 }
  0x10   : > { %p51_p5 = scmp.ne.s32.totalorder %s659_s10, %s655_s9  ;;  %p52_p6 = scmp.eq.s32.totalorder %s371_s17, 0 }
  0x11   : > { %s64_s24 = sadd.s32 1, %s651_s8  ;;  %s989_s20 = smov (%p31_p4, %s987_s20), 0 }
  0x12   : > { %965 = sst [smem:[#allocation9_spill]] %s989_s20  ;;  %p777_p7 = por %p52_p6, %p51_p5 }
  0x13   : > { %p74_p8 = scmp.ne.s32.totalorder %s651_s8, %s647_s7  ;;  %s33_s26 = ssub.s32 %s679_s15, %s989_s20 }
  0x14   : > { %p75_p9 = scmp.eq.s32.totalorder %s371_s17, 5  ;;  %s35_s27 = sor.u32 %s34_s22, %s33_s26 }
  0x15   : > { %p62_p10 = scmp.eq.s32.totalorder %s33_s26, 0  ;;  %p36_p11 = scmp.eq.s32.totalorder %s35_s27, 0 }
  0x16   : > { %p785_p12 = por %p75_p9, %p74_p8  ;;  %p80_p13 = scmp.ne.s32.totalorder %s647_s7, %s643_s6 }
  0x17   : > { %s790_s29 = scalar_select %p62_p10, %s651_s8, %s64_s24  }
  0x18   : > { %s793_s30 = scalar_select %p36_p11, %s663_s11, %s38_s21  }
  0x19   : > { %p81_p0 = scmp.eq.s32.totalorder %s372_s18, 5  ;;  %p439_p1 = scmp.lt.s32.totalorder %s683_s16, 6 }
  0x1a   : > { %s101_s3 = sand.u32 1, %s663_s11   ;;  %s426_s5 = smul.u32 12, %s679_s15 }
  0x1b   : > { %p798_p2 = por %p81_p0, %p80_p13  ;;  %s375_s4 = sshll.u32 %s101_s3, 5 }
  0x1c   : > { %s105_s9 = scalar_lea.vmem [#allocation2], %s375_s4  ;;  %p806_p4 = pnand %p439_p1, %p769_p3 }
  0x1d   : > { %s113_s17 = sshll.u32 %s105_s9, 4  ;;  %s110_s21 = sadd.s32 %s675_s14, %s426_s5  ;;  %s114_s17 = int_to_ptr.vmem [resolvable:$true] %s113_s17 }
  0x1e   : > { %s376_s24 = sshll.u32 %s110_s21, 7  ;;  %s102_s20 = scalar_lea.sflag [#allocation3], %s101_s3 }
  0x1f   : > { %s112_s27 = scalar_lea.hbm %s959_s0, %s376_s24  ;;  %p537_p5 = pneg %p806_p4 }
  0x20   : > { %s548_s19 = scalar_lea.vmem %s114_s17, 512  ;;  %s685_s23 = smov [#allocation2]  }
  0x21   : > { %p549_p6 = scmp.ne.s32.totalorder %s114_s17, %s548_s19  ;;  %s553_s4 = sshll.u32 %s685_s23, 4  ;;  %s554_s4 = int_to_ptr.vmem [resolvable:$false] %s553_s4 }
  0x22   : > { %s555_s9 = scalar_lea.vmem %s554_s4, 1024  ;;  %p556_p3 = scmp.lt.s32.totalorder %s114_s17, %s554_s4 }
  0x23   : > { %p551_p8 = pnand %p549_p6, %p537_p5  ;;  %p557_p10 = scmp.lt.s32.totalorder %s555_s9, %s548_s19 }
  0x25   : > { %p552_p9 = pneg %p551_p8  ;;  %p558_p11 = por %p557_p10, %p556_p3 }
  0x27   : > { %p559_p13 = pnand %p558_p11, %p552_p9 }
  0x29   : > { %562 = shalt.err (!%p559_p13)
}
  0x2a   : > { %s686_s5 = smov 384   ;;  %s687_s3 = smov 128  }
  0x2b   : > { %s688_s21 = smov 8   ;;  %p377_p0 = scmp.ge.s32.totalorder %s683_s16, 1 }
  0x2c   : > { %434 = dma.hbm_to_vmem [thread:$0]  (!%p806_p4), %s112_s27, 512, %s114_s17, %s102_s20, %s686_s5, %s687_s3, %s688_s21  }
  0x2d   : > { %p121_p1 = scmp.lt.s32.totalorder %s683_s16, 7 }
  0x2f   : > { %p122_p5 = pnand %p377_p0, %p121_p1 }
  0x30   : > { %s127_s24 = sand.u32 (!%p122_p5), 1, %s659_s10  }
  0x31   : > { %125 = sbr.rel (%p122_p5) target bundleno = 297 (0x129), region = 24  ;;  %s378_s18 = sshll.u32 (!%p122_p5), %s127_s24, 5 }
  0x32   : > { %s128_s19 = scalar_lea.sflag (!%p122_p5), [#allocation3], %s127_s24  ;;  %s131_s26 = scalar_lea.vmem (!%p122_p5), [#allocation2], %s378_s18 }
  0x36   : > { %634 = dma.done.wait (%p777_p7), %s128_s19, 512  }
  0x37   : > { %636 = vsyncadd (%p777_p7), %s128_s19, 4294966784  ;;  %s147_s23 = sand.u32 1, %s647_s7   ;;  %p380_p4 = scmp.ne.s32.totalorder %s667_s12, 0 }
  0x38   : > { %s379_s20 = sshll.u32 %s147_s23, 5 }
  0x39   : > { %s828_s17 = scalar_lea.vmem [#allocation5], %s379_s20  ;;  %153 = sbr.rel (%p380_p4) target bundleno = 65 (0x41), region = 32 }
  0x3e   : > { %vm154_vm0 = vcmask 261120   ;;  %v689_v0 = vmov 0.0  }
  0x3f   : > { %155 = vst.msk [vmem:[%s828_s17] sm:$0xff] %vm154_vm0, %v689_v0  ;;  %156 = vst.msk [vmem:[%s828_s17 + $0x8] sm:$0xff] %vm154_vm0, %v689_v0 }
  0x40   : > { %157 = vst.msk [vmem:[%s828_s17 + $0x10] sm:$0xff] %vm154_vm0, %v689_v0  ;;  %158 = vst.msk [vmem:[%s828_s17 + $0x18] sm:$0xff] %vm154_vm0, %v689_v0 }
  0x41 PF: > { %v163_v1 = vlaneseq  ;;  %s381_s25 = sshll.u32 %s667_s12, 7  ;;  %v162_v2 = vld [vmem:[%s131_s26 + $0x18] sm:$0xff]  ;;  %v161_v6 = vld [vmem:[%s131_s26 + $0x10] sm:$0xff]  ;;  %v159_v7 = vld [vmem:[%s131_s26] sm:$0xff]  ;;  %s395_s12 = sshll.u32 %s671_s13, 9  ;;  %vm266_vm2 = vcmask 261120  }
  0x42   : > { %s166_s22 = ssub.s32 288, %s381_s25  ;;  %v160_v8 = vld [vmem:[%s131_s26 + $0x8] sm:$0xff]  ;;  %s285_s27 = sshll.u32 %s828_s17, 4  ;;  %s891_s27 = int_to_ptr.vmem [resolvable:$true] %s285_s27 }
  0x43   : > { %v164_v3 = vand.u32 127, %v163_v1  ;;  %v167_v4 = vstv %s166_s22  ;;  %s889_s5 = scalar_lea.hbm %s960_s1, %s395_s12  ;;  %s899_s13 = scalar_lea.sflag [#allocation4], %s147_s23 }
  0x44   : > { %s563_s3 = scalar_lea.vmem %s891_s27, 512  ;;  %s690_s21 = smov [#allocation5]  }
  0x45   : > { %vm836_vm1 = vcmp.lt.s32.totalorder %v164_v3, %v167_v4  ;;  %p564_p7 = scmp.ne.s32.totalorder %s891_s27, %s563_s3  ;;  %s567_s24 = sshll.u32 %s690_s21, 4  ;;  %s568_s24 = int_to_ptr.vmem [resolvable:$false] %s567_s24 }
  0x46   : > { %404 = vmatprep.subr.msk.mxu0 %vm836_vm1, %v162_v2  ;;  %418 = vmatprep.subr.msk.mxu1 %vm836_vm1, %v162_v2  ;;  %v174_v9 = vld [vmem:[%s828_s17 + $0x8] sm:$0xff]  ;;  %v173_v13 = vld [vmem:[%s828_s17] sm:$0xff]  ;;  %s569_s18 = scalar_lea.vmem %s568_s24, 1024  ;;  %p570_p9 = scmp.lt.s32.totalorder %s891_s27, %s568_s24 }
  0x47   : > { %405 = vmatpush3.xpose.msk.msra.mxu0 %vm836_vm1, %v162_v2  ;;  %422 = vmatpush3.xpose.msk.msra.mxu1 %vm836_vm1, %v162_v2  ;;  %v176_v10 = vld [vmem:[%s828_s17 + $0x18] sm:$0xff]  ;;  %v175_v14 = vld [vmem:[%s828_s17 + $0x10] sm:$0xff]  ;;  %p565_p6 = pnand %p564_p7, %p785_p12  ;;  %p571_p3 = scmp.lt.s32.totalorder %s569_s18, %s563_s3 }
  0x48   : > { %406 = vmatprep.subr.msk.mxu0 %vm836_vm1, %v161_v6  ;;  %419 = vmatprep.subr.msk.mxu1 %vm836_vm1, %v161_v6 }
  0x49   : > { %412 = vmatprep.mubr.msk.f32.mxu0 %vm836_vm1, %v159_v7  ;;  %415 = vmatprep.mubr.msk.f32.mxu1 %vm836_vm1, %v161_v6  ;;  %p566_p8 = pneg %p565_p6  ;;  %p572_p10 = por %p571_p3, %p570_p9 }
  0x4b   : > { %407 = vmatpush3.xpose.msk.msra.mxu0 %vm836_vm1, %v161_v6  ;;  %423 = vmatpush3.xpose.msk.msra.mxu1 %vm836_vm1, %v161_v6  ;;  %p573_p11 = pnand %p572_p10, %p566_p8 }
  0x4c   : > { %408 = vmatprep.subr.msk.mxu0 %vm836_vm1, %v160_v8  ;;  %420 = vmatprep.subr.msk.mxu1 %vm836_vm1, %v160_v8 }
  0x4f   : > { %409 = vmatpush3.xpose.msk.msra.mxu0 %vm836_vm1, %v160_v8  ;;  %424 = vmatpush3.xpose.msk.msra.mxu1 %vm836_vm1, %v160_v8 }
  0x50   : > { %410 = vmatprep.subr.msk.mxu0 %vm836_vm1, %v159_v7  ;;  %421 = vmatprep.subr.msk.mxu1 %vm836_vm1, %v159_v7 }
  0x53   : > { %411 = vmatpush3.xpose.msk.msra.mxu0 %vm836_vm1, %v159_v7  ;;  %425 = vmatpush3.xpose.msk.msra.mxu1 %vm836_vm1, %v159_v7 }
  0x56   : > { %413 = vmatmul.mubr.msk.f32.vlgmr.msra.gmra.mxu0 %vm836_vm1, %v160_v8  ;;  %416 = vmatmul.mubr.msk.f32.vlgmr.msra.gmra.mxu1 %vm836_vm1, %v162_v2 }
 0x116   : > { %v414_v11 = vpop.f32.mrf.mxu0  ;;  %v417_v12 = vpop.f32.mrf.mxu1 }
 0x117   : > { %v263_v15 = vadd.f32 %v414_v11, %v174_v9  ;;  %v265_v16 = vadd.f32 %v417_v12, %v176_v10 }
 0x118   : > { %v243_v17 = vpop.f32.mrf.mxu0  ;;  %v253_v18 = vpop.f32.mrf.mxu1 }
 0x119   : > { %268 = vst.msk [vmem:[%s828_s17 + $0x8] sm:$0xff] %vm266_vm2, %v263_v15  ;;  %270 = vst.msk [vmem:[%s828_s17 + $0x18] sm:$0xff] %vm266_vm2, %v265_v16  ;;  %v262_v19 = vadd.f32 %v243_v17, %v173_v13  ;;  %v264_v20 = vadd.f32 %v253_v18, %v175_v14 }
 0x11b   : > { %267 = vst.msk [vmem:[%s828_s17] sm:$0xff] %vm266_vm2, %v262_v19  ;;  %269 = vst.msk [vmem:[%s828_s17 + $0x10] sm:$0xff] %vm266_vm2, %v264_v20 }
 0x11c   : > { %576 = shalt.err (!%p573_p11)
}
 0x11d   : > { %s577_s19 = scalar_lea.hbm %s889_s5, 512  ;;  %s581_s20 = scalar_lea.hbm %s960_s1, 1024 }
 0x11e   : > { %p578_p13 = scmp.ne.s32.totalorder %s889_s5, %s577_s19  ;;  %p582_p5 = scmp.lt.s32.totalorder %s889_s5, %s960_s1 }
 0x11f   : > { %p583_p4 = scmp.lt.s32.totalorder %s581_s20, %s577_s19 }
 0x120   : > { %p579_p0 = pnand %p578_p13, %p785_p12 }
 0x121   : > { %p584_p7 = por %p583_p4, %p582_p5 }
 0x122   : > { %p580_p1 = pneg %p579_p0 }
 0x124   : > { %p585_p6 = pnand %p584_p7, %p580_p1 }
 0x126   : > { %588 = shalt.err (!%p585_p6)
}
 0x127   : > { %s691_s22 = smov 128   ;;  %s692_s12 = smov 8  }
 0x128   : > { %429 = dma.vmem_to_hbm [thread:$0]  (%p785_p12), %s891_s27, 512, %s889_s5, %s899_s13, %s691_s22, %s691_s22, %s692_s12  }
 0x129 PF: > { %p440_p8 = scmp.ge.s32.totalorder %s683_s16, 2  ;;  %s300_s4 = sand.u32 1, %s643_s6  }
 0x12a   : > { %s301_s9 = scalar_lea.sflag [#allocation4], %s300_s4 }
 0x12b   : > { %p436_p9 = pnand %p440_p8, %p798_p2 }
 0x12d   : > { %p437_p3 = pneg %p436_p9 }
 0x12f   : > { %638 = dma.done.wait (%p437_p3), %s301_s9, 512  }
 0x130   : > { %640 = vsyncadd (%p437_p3), %s301_s9, 4294966784  ;;  %s17_s16 = sadd.s32 1, %s683_s16   ;;  %s972_s28 = sld [smem:[#allocation8_spill]] }
 0x131   : > { %p14_p10 = scmp.ge.s32.totalorder %s17_s16, 8   ;;  %s973_s27 = sld [smem:[#allocation9_spill]] }
 0x132   : > { %s974_s6 = smov %s647_s7  ;;  %s975_s7 = smov %s651_s8 }
 0x133   : > { %s976_s8 = smov %s790_s29  ;;  %s977_s9 = smov %s659_s10 }
 0x134   : > { %s978_s10 = smov %s663_s11  ;;  %s979_s11 = smov %s793_s30 }
 0x135   : > { %s980_s12 = smov %s675_s14  ;;  %s981_s13 = smov %s679_s15 }
 0x136   : > { %s982_s14 = smov %s972_s28  ;;  %16 = sbr.rel (!%p14_p10) target bundleno = 9 (0x9), region = 73 }
 0x137   : > { %s983_s15 = smov %s973_s27 }
 0x13b   :  { %306 = vsyncpa [#allocation3], 1 }
 0x13c   :  { %308 = vsyncpa [#allocation3 + $0x1], 1 }
 0x13d   :  { %309 = vsyncpa [#allocation4], 1 }
 0x13e   :  { %311 = vsyncpa [#allocation4 + $0x1], 1 }

</bundles_post_ra>
